<compile_context>
chip_gen: v7x
topology: tpu7x:2x2x1
jax: 0.10.0
libtpu: 0.0.40
codegen_flags: <defaults>
</compile_context>

<pallas_src>
import functools
import math

import jax
import jax.numpy as jnp
from jax.experimental import pallas as pl
from jax.experimental.pallas import tpu as pltpu

_LANE = 128
_DENSE_LANE_WIDTH = 512            # lane width used when repacking narrow feature dims
_TARGET_BLOCK_ELEMS = 1 << 20      # ~1M elements per grid step (EUP-bound; overhead <3%)


def _round_up(a, b):
    return (a + b - 1) // b * b


def _sublane_multiple(dtype):
    # second-to-last block dim multiple needed for sublane packing of this dtype
    return {1: 32, 2: 16, 4: 8}.get(jnp.dtype(dtype).itemsize, 8)


def _tpu_kind():
    try:
        return jax.devices()[0].device_kind.lower()
    except Exception:
        return ""


def _bce_logits_partial_kernel(
    x_ref, t_ref, partial_ref, *, pos_weight, lane, block_rows, rem_last, needs_mask
):
    x = x_ref[...].astype(jnp.float32)
    z = t_ref[...].astype(jnp.float32)

    # softplus(-x) = max(-x, 0) + log1p(exp(-|x|))   (numerically stable)
    softplus_neg_x = jnp.maximum(-x, 0.0) + jnp.log1p(jnp.exp(-jnp.abs(x)))
    if pos_weight is None:
        # == max(x,0) - x*z + log1p(exp(-|x|))
        loss = (1.0 - z) * x + softplus_neg_x
    else:
        w = 1.0 + (float(pos_weight) - 1.0) * z
        loss = (1.0 - z) * x + w * softplus_neg_x

    def fold(v):
        # VPU-only partial reduction: add whole 8-row sublane groups together.
        # No cross-lane (XLU) work per step; the single cross-lane reduce happens
        # once, outside the kernel, on the tiny partials array.
        return jnp.sum(v.reshape(block_rows // 8, 8, lane), axis=0)

    if not needs_mask:
        partial_ref[...] = fold(loss)
    else:
        is_last = pl.program_id(0) == pl.num_programs(0) - 1

        @pl.when(jnp.logical_not(is_last))
        def _():
            # Full blocks pay no masking cost.
            partial_ref[...] = fold(loss)

        @pl.when(is_last)
        def _():
            # Element-granularity mask for the tail of the last block (covers both
            # wrapper zero-padding and out-of-range rows).  Must stay a select
            # (jnp.where), NOT a multiply: discarded lanes may hold NaN/Inf garbage
            # from the padded out-of-range block read.
            rid = jax.lax.broadcasted_iota(jnp.int32, loss.shape, 0)
            cid = jax.lax.broadcasted_iota(jnp.int32, loss.shape, 1)
            valid = rid * lane + cid < rem_last
            partial_ref[...] = fold(jnp.where(valid, loss, 0.0))


def binary_cross_entropy_logits(output, target_dict, pos_weight=None, *, max_block_rows=16384):
    """Pallas equivalent of BinaryCrossEntropyLogits.forward(output, target).

    Prefer int8/bool labels over int32 where possible (halves label HBM traffic);
    no dtype casts are done in this wrapper.
    """
    # TODO(synk): per-class pos_weight tensors (broadcast over last dim) are not
    # supported; only None or a Python scalar pos_weight is handled.
    target = target_dict["target"]
    assert output.shape == target.shape

    if output.ndim == 0:
        output = output.reshape(1)
        target = target.reshape(1)

    total = math.prod(output.shape)
    if total == 0:
        # torch: mean reduction over an empty tensor is NaN
        return jnp.full((), jnp.nan, dtype=jnp.float32)

    kind = _tpu_kind()
    is_v7 = "v7" in kind
    # v7x per-TC VMEM is 64 MiB physical; others have 128 MiB.
    vmem_limit = (48 if is_v7 else 64) * 1024 * 1024

    cols = output.shape[-1]
    if cols % _LANE == 0:
        # Already lane-dense: merge leading dims (free reshape, no extra HBM pass).
        lane = cols
        x2 = output.reshape(-1, lane)
        t2 = target.reshape(-1, lane)
    else:
        # Lane-sparse feature dim: repack to a dense (-1, 512) slab so every vreg
        # carries full lanes (the op is a pure elementwise + global sum, so the
        # 2-D shape is arbitrary).  The pad region is masked out in-kernel.
        lane = _DENSE_LANE_WIDTH
        pad = _round_up(total, lane) - total
        x2 = jnp.pad(output.reshape(-1), (0, pad)).reshape(-1, lane)
        t2 = jnp.pad(target.reshape(-1), (0, pad)).reshape(-1, lane)
    rows = x2.shape[0]

    # Block sizing: ~_TARGET_BLOCK_ELEMS elements per step, rounded to the
    # sublane-packing multiple of the narrowest input dtype.
    sub = max(_sublane_multiple(x2.dtype), _sublane_multiple(t2.dtype))
    block_rows = max(1, _TARGET_BLOCK_ELEMS // lane)
    block_rows = min(block_rows, max_block_rows)
    block_rows = _round_up(max(block_rows, sub), sub)
    block_rows = min(block_rows, _round_up(rows, sub))

    grid_n = pl.cdiv(rows, block_rows)
    covered = grid_n * block_rows * lane
    needs_mask = covered != total
    # Number of valid elements in the last grid step (static Python int).
    rem_last = total - (grid_n - 1) * block_rows * lane

    # Plain "parallel" does not shard across TensorCores; only CORE_PARALLEL does.
    # v7x has 2 TCs (2x EUP) and the steps are fully independent.
    if is_v7 and grid_n >= 2:
        dim_sem = (pltpu.CORE_PARALLEL,)
    else:
        dim_sem = ("parallel",)

    kernel = functools.partial(
        _bce_logits_partial_kernel,
        pos_weight=pos_weight,
        lane=lane,
        block_rows=block_rows,
        rem_last=rem_last,
        needs_mask=needs_mask,
    )

    partials = pl.pallas_call(
        kernel,
        out_shape=jax.ShapeDtypeStruct((grid_n * 8, lane), jnp.float32),
        grid_spec=pltpu.PrefetchScalarGridSpec(
            num_scalar_prefetch=0,
            grid=(grid_n,),
            in_specs=[
                pl.BlockSpec((block_rows, lane), lambda i: (i, 0)),
                pl.BlockSpec((block_rows, lane), lambda i: (i, 0)),
            ],
            out_specs=pl.BlockSpec((8, lane), lambda i: (i, 0)),
        ),
        compiler_params=pltpu.CompilerParams(
            dimension_semantics=dim_sem,
            vmem_limit_bytes=vmem_limit,
        ),
    )(x2, t2)

    # Tiny final cross-lane reduce + mean scale (partials are a few KiB).
    return jnp.sum(partials) / total


def _reference(output, target, pos_weight=None):
    x = output.astype(jnp.float32)
    z = target.astype(jnp.float32)
    sp = jnp.maximum(-x, 0.0) + jnp.log1p(jnp.exp(-jnp.abs(x)))
    if pos_weight is None:
        l = (1.0 - z) * x + sp
    else:
        l = (1.0 - z) * x + (1.0 + (pos_weight - 1.0) * z) * sp
    return jnp.mean(l)


if __name__ == "__main__":
    key = jax.random.PRNGKey(0)
    k1, k2, k3, k4, k5, k6, k7, k8 = jax.random.split(key, 8)

    checks = []

    # Test 1: f32 logits / int32 labels, cols % 128 == 0, single block, no masking.
    logits1 = jax.random.normal(k1, (16, 128), dtype=jnp.float32) * 2.0
    labels1 = (jax.random.uniform(k2, (16, 128)) > 0.5).astype(jnp.int32)
    checks.append(
        (
            binary_cross_entropy_logits(logits1, {"target": labels1}),
            _reference(logits1, labels1),
        )
    )

    # Test 2: bf16 logits / int8 labels, 3-D input, narrow (40) feature dim,
    # pos_weight -> lane-dense repack path with element-granularity tail mask.
    logits2 = (jax.random.normal(k3, (4, 16, 40), dtype=jnp.float32) * 2.0).astype(jnp.bfloat16)
    labels2 = (jax.random.uniform(k4, (4, 16, 40)) > 0.5).astype(jnp.int8)
    checks.append(
        (
            binary_cross_entropy_logits(logits2, {"target": labels2}, pos_weight=2.0),
            _reference(logits2, labels2, pos_weight=2.0),
        )
    )

    # Test 3: ragged row count -> multi-block grid; mask only on the last block.
    logits3 = jax.random.normal(k5, (20, 128), dtype=jnp.float32)
    labels3 = (jax.random.uniform(k6, (20, 128)) > 0.5).astype(jnp.int32)
    checks.append(
        (
            binary_cross_entropy_logits(logits3, {"target": labels3}, max_block_rows=8),
            _reference(logits3, labels3),
        )
    )

    # Test 4: f32 logits / f32 labels, non-128-multiple feature dim (200) ->
    # lane-dense repack with padding masked out.
    logits4 = jax.random.normal(k7, (3, 200), dtype=jnp.float32)
    labels4 = (jax.random.uniform(k8, (3, 200)) > 0.5).astype(jnp.float32)
    checks.append(
        (
            binary_cross_entropy_logits(logits4, {"target": labels4}),
            _reference(logits4, labels4),
        )
    )

    for got, want in checks:
        got = jax.block_until_ready(got)
        assert jnp.allclose(got, want, rtol=1e-5, atol=1e-5), (got, want)

    print("KERNEL_OK")
</pallas_src>

<mosaic_0001>
module attributes {stable_mosaic.version = 11 : i64} {
  func.func @_bce_logits_partial_kernel(%arg0: i32, %arg1: memref<16x128xf32, #tpu.memory_space<vmem>>, %arg2: memref<16x128xi32, #tpu.memory_space<vmem>>, %arg3: memref<8x128xf32, #tpu.memory_space<vmem>>) attributes {dimension_semantics = [#tpu.dimension_semantics<parallel>], iteration_bounds = array<i64: 1>, scalar_prefetch = 0 : i64, scratch_operands = 0 : i64, tpu.core_type = #tpu.core_type<tc>, window_params = [{transform_indices = @transform_0, window_bounds = array<i64: 16, 128>}, {transform_indices = @transform_1, window_bounds = array<i64: 16, 128>}, {transform_indices = @transform_2, window_bounds = array<i64: 8, 128>}]} {
    %c0 = arith.constant 0 : index
    %c0_0 = arith.constant 0 : index
    %0 = vector.load %arg1[%c0, %c0_0] : memref<16x128xf32, #tpu.memory_space<vmem>>, vector<16x128xf32>
    %c0_1 = arith.constant 0 : index
    %c0_2 = arith.constant 0 : index
    %1 = vector.load %arg2[%c0_1, %c0_2] : memref<16x128xi32, #tpu.memory_space<vmem>>, vector<16x128xi32>
    %2 = arith.sitofp %1 : vector<16x128xi32> to vector<16x128xf32>
    %cst = arith.constant 0.000000e+00 : f32
    %3 = vector.broadcast %cst : f32 to vector<16x128xf32>
    %4 = arith.subf %3, %0 : vector<16x128xf32>
    %cst_3 = arith.constant 0.000000e+00 : f32
    %5 = vector.broadcast %cst_3 : f32 to vector<16x128xf32>
    %6 = arith.maximumf %4, %5 : vector<16x128xf32>
    %7 = math.absf %0 : vector<16x128xf32>
    %cst_4 = arith.constant 0.000000e+00 : f32
    %8 = vector.broadcast %cst_4 : f32 to vector<16x128xf32>
    %9 = arith.subf %8, %7 : vector<16x128xf32>
    %10 = math.exp %9 : vector<16x128xf32>
    %11 = math.log1p %10 : vector<16x128xf32>
    %12 = arith.addf %6, %11 : vector<16x128xf32>
    %cst_5 = arith.constant 1.000000e+00 : f32
    %13 = vector.broadcast %cst_5 : f32 to vector<16x128xf32>
    %14 = arith.subf %13, %2 : vector<16x128xf32>
    %15 = arith.mulf %14, %0 : vector<16x128xf32>
    %16 = arith.addf %15, %12 : vector<16x128xf32>
    %17 = vector.shape_cast %16 : vector<16x128xf32> to vector<2x8x128xf32>
    %cst_6 = arith.constant dense<0.000000e+00> : vector<8x128xf32>
    %18 = vector.multi_reduction <add>, %17, %cst_6 [0] : vector<2x8x128xf32> to vector<8x128xf32>
    %c0_7 = arith.constant 0 : index
    %c0_8 = arith.constant 0 : index
    %19 = vector.load %arg3[%c0_7, %c0_8] : memref<8x128xf32, #tpu.memory_space<vmem>>, vector<8x128xf32>
    tpu.vector_store %arg3[%c0_7, %c0_8], %18 {strides = array<i32>} : memref<8x128xf32, #tpu.memory_space<vmem>>, vector<8x128xf32>,
    return
  }
  func.func @transform_0(%arg0: i32) -> (i32, i32) {
    %c0_i32 = arith.constant 0 : i32
    %c0_i32_0 = arith.constant 0 : i32
    return %arg0, %c0_i32 : i32, i32
  }
  func.func @transform_1(%arg0: i32) -> (i32, i32) {
    %c0_i32 = arith.constant 0 : i32
    %c0_i32_0 = arith.constant 0 : i32
    return %arg0, %c0_i32 : i32, i32
  }
  func.func @transform_2(%arg0: i32) -> (i32, i32) {
    %c0_i32 = arith.constant 0 : i32
    %c0_i32_0 = arith.constant 0 : i32
    return %arg0, %c0_i32 : i32, i32
  }
}

</mosaic_0001>

<bundles_post_ra>
// kernel: tpu_custom_call.1
= control target key start
LH: loop header
LB: loop body
LE: loop exit
PB: predicated region body
PF: predicated region fallthrough
CT: control target
= control target key end

     0   :  { %7 = vsyncpa [#allocation3], 0  ;;  %s243_s0 = inlined_call_operand.hbm [shape: f32[16,128], index: 0, kind: input, shape index: {}]   ;;  %s244_s1 = inlined_call_operand.hbm [shape: s32[16,128], index: 1, kind: input, shape index: {}]   ;;  %s245_s2 = inlined_call_operand.hbm [shape: f32[8,128], index: 2, kind: output, shape index: {}]  }
   0x1   :  { %8 = vsyncpa [#allocation6], 0 }
   0x2   :  { %9 = vsyncpa [#allocation4], 0  ;;  %s187_s9 = smov [#allocation2]   ;;  %s115_s13 = scalar_lea.hbm %s243_s0, 256 }
   0x3   :  { %s15_s10 = sshll.u32 %s187_s9, 4  ;;  %p116_p0 = scmp.ne.s32.totalorder %s243_s0, %s115_s13  ;;  %s16_s10 = int_to_ptr.vmem [resolvable:$true] %s15_s10 }
   0x4   :  { %p119_p1 = scmp.lt.u32.totalorder %s115_s13, %s243_s0 }
   0x6   :  { %p121_p2 = pnand %p119_p1, %p116_p0 }
   0x8   :  { %124 = shalt.err (!%p121_p2)
}
   0x9   :  { %s125_s18 = scalar_lea.vmem %s16_s10, 256  ;;  %p130_p4 = scmp.lt.s32.totalorder %s16_s10, %s16_s10 }
   0xa   :  { %p126_p3 = scmp.ne.s32.totalorder %s16_s10, %s125_s18  ;;  %p131_p5 = scmp.lt.s32.totalorder %s125_s18, %s125_s18 }
   0xc   :  { %p132_p6 = por %p131_p5, %p130_p4 }
   0xe   :  { %p133_p7 = pnand %p132_p6, %p126_p3 }
  0x10   :  { %136 = shalt.err (!%p133_p7)
}
  0x11   :  { %s188_s19 = smov 128   ;;  %s189_s20 = smov 8  }
  0x12   :  { %21 = dma.hbm_to_vmem [thread:$0]  %s243_s0, 256, %s16_s10, [#allocation3], %s188_s19, %s188_s19, %s189_s20  }
  0x13   :  { %s190_s23 = smov [#allocation5]   ;;  %s137_s27 = scalar_lea.hbm %s244_s1, 256 }
  0x14   :  { %s27_s24 = sshll.u32 %s190_s23, 4  ;;  %p138_p8 = scmp.ne.s32.totalorder %s244_s1, %s137_s27  ;;  %s28_s24 = int_to_ptr.vmem [resolvable:$true] %s27_s24 }
  0x15   :  { %p141_p9 = scmp.lt.u32.totalorder %s137_s27, %s244_s1 }
  0x17   :  { %p143_p10 = pnand %p141_p9, %p138_p8 }
  0x19   :  { %146 = shalt.err (!%p143_p10)
}
  0x1a   :  { %s147_s4 = scalar_lea.vmem %s28_s24, 256  ;;  %p152_p12 = scmp.lt.s32.totalorder %s28_s24, %s28_s24 }
  0x1b   :  { %p148_p11 = scmp.ne.s32.totalorder %s28_s24, %s147_s4  ;;  %p153_p13 = scmp.lt.s32.totalorder %s147_s4, %s147_s4 }
  0x1d   :  { %p154_p0 = por %p153_p13, %p152_p12 }
  0x1f   :  { %p155_p1 = pnand %p154_p0, %p148_p11 }
  0x21   :  { %158 = shalt.err (!%p155_p1)
}
  0x22   :  { %33 = dma.hbm_to_vmem [thread:$0]  %s244_s1, 256, %s28_s24, [#allocation6], %s188_s19, %s188_s19, %s189_s20  }
  0x23   :  { %181 = dma.done.wait [#allocation3], 256  }
  0x24   :  { %182 = vsyncadd [#allocation3], 4294967040 }
  0x25   :  { %183 = dma.done.wait [#allocation6], 256  }
  0x26   :  { %184 = vsyncadd [#allocation6], 4294967040  ;;  %v40_v0 = vld [vmem:[#allocation2] sm:$0xff]  ;;  %v41_v1 = vld [vmem:[#allocation2 + $0x8] sm:$0xff]  ;;  %s191_s1 = smov [#allocation7]  }
  0x27   :  { %v50_v2 = vand.u32 2147483647, %v40_v0  ;;  %v51_v3 = vand.u32 2147483647, %v41_v1  ;;  %v42_v12 = vld [vmem:[#allocation5] sm:$0xff]  ;;  %v43_v14 = vld [vmem:[#allocation5 + $0x8] sm:$0xff] }
  0x28   :  { %v44_v16 = vcvt.s32.f32 %v42_v12  ;;  %v45_v17 = vcvt.s32.f32 %v43_v14  ;;  %v46_v19 = vsub.f32 0.0, %v40_v0  ;;  %v47_v22 = vsub.f32 0.0, %v41_v1  ;;  %s92_s6 = sshll.u32 %s191_s1, 4  ;;  %s93_s6 = int_to_ptr.vmem [resolvable:$true] %s92_s6 }
  0x29   :  { %v52_v4 = vsub.f32 0.0, %v50_v2  ;;  %v53_v5 = vsub.f32 0.0, %v51_v3  ;;  %s159_s7 = scalar_lea.vmem %s93_s6, 128  ;;  %p164_p3 = scmp.lt.s32.totalorder %s93_s6, %s93_s6 }
  0x2a   :  { %v78_v24 = vsub.f32 1.0, %v44_v16  ;;  %v79_v26 = vsub.f32 1.0, %v45_v17  ;;  %v48_v28 = vmax.f32 %v46_v19, 0.0  ;;  %v49_v31 = vmax.f32 %v47_v22, 0.0  ;;  %p160_p2 = scmp.ne.s32.totalorder %s93_s6, %s159_s7  ;;  %p165_p4 = scmp.lt.s32.totalorder %s159_s7, %s159_s7 }
  0x2b   :  { %v54_v6 = vmul.f32 1.442695, %v52_v4  ;;  %v56_v7 = vmul.f32 1.442695, %v53_v5 }
  0x2c   :  { %v80_v34 = vmul.f32 %v78_v24, %v40_v0  ;;  %v81_v36 = vmul.f32 %v79_v26, %v41_v1  ;;  %p166_p5 = por %p165_p4, %p164_p3 }
  0x2d   :  { %107 = vpow2.f32 %v54_v6 }
  0x2e   :  { %109 = vpow2.f32 %v56_v7  ;;  %p167_p6 = pnand %p166_p5, %p160_p2 }
  0x37   :  { %v108_v8 = vpop.eup %107 }
  0x38   :  { %v110_v9 = vpop.eup %109  ;;  %v58_v10 = vadd.f32 1.0, %v108_v8  ;;  %v61_v13 = vmul.f32 -0.5, %v108_v8  ;;  %v64_v20 = vand.u32 2147483647, %v108_v8 }
  0x39   :  { %v67_v11 = vadd.f32 1.0, %v110_v9  ;;  %v70_v15 = vmul.f32 -0.5, %v110_v9  ;;  %v73_v23 = vand.u32 2147483647, %v110_v9 }
  0x3a   :  { %111 = vlog2.f32 %v58_v10  ;;  %v62_v18 = vadd.f32 1.0, %v61_v13  ;;  %vm65_vm0 = vcmp.lt.f32.partialorder %v64_v20, 0.0004427343 }
  0x3b   :  { %113 = vlog2.f32 %v67_v11  ;;  %v71_v21 = vadd.f32 1.0, %v70_v15  ;;  %vm74_vm1 = vcmp.lt.f32.partialorder %v73_v23, 0.0004427343 }
  0x3c   :  { %v63_v25 = vmul.f32 %v108_v8, %v62_v18 }
  0x3d   :  { %v72_v29 = vmul.f32 %v110_v9, %v71_v21 }
  0x44   :  { %v112_v27 = vpop.eup %111 }
  0x45   :  { %v114_v30 = vpop.eup %113  ;;  %v60_v32 = vmul.f32 0.6931472, %v112_v27 }
  0x46   :  { %v69_v33 = vmul.f32 0.6931472, %v114_v30 }
  0x47   :  { %v66_v35 = vsel %vm65_vm0, %v63_v25, %v60_v32 }
  0x48   :  { %v75_v37 = vsel %vm74_vm1, %v72_v29, %v69_v33  ;;  %v76_v38 = vadd.f32 %v66_v35, %v48_v28 }
  0x49   :  { %v77_v39 = vadd.f32 %v75_v37, %v49_v31 }
  0x4a   :  { %v82_v40 = vadd.f32 %v80_v34, %v76_v38 }
  0x4b   :  { %v83_v41 = vadd.f32 %v81_v36, %v77_v39 }
  0x4d   :  { %v84_v42 = vadd.f32 %v83_v41, %v82_v40 }
  0x4f   :  { %85 = vst [vmem:[#allocation7] sm:$0xff] %v84_v42 }
  0x50   :  { %170 = shalt.err (!%p167_p6)
}
  0x51   :  { %s171_s10 = scalar_lea.hbm %s245_s2, 128 }
  0x52   :  { %p172_p7 = scmp.ne.s32.totalorder %s245_s2, %s171_s10  ;;  %p175_p8 = scmp.lt.u32.totalorder %s171_s10, %s245_s2 }
  0x54   :  { %p177_p9 = pnand %p175_p8, %p172_p7 }
  0x56   :  { %180 = shalt.err (!%p177_p9)
}
  0x57   :  { %95 = dma.vmem_to_hbm [thread:$0]  %s93_s6, 128, %s245_s2, [#allocation4]  }
  0x58   :  { %185 = dma.done.wait [#allocation4], 128  }
  0x59   :  { %186 = vsyncadd [#allocation4], 4294967168 }
  0x5a   :  { %99 = vsyncpa [#allocation3], 1 }
  0x5b   :  { %100 = vsyncpa [#allocation6], 1 }
  0x5c   :  { %101 = vsyncpa [#allocation4], 1 }

</bundles_post_ra>
